<compile_context>
chip_gen: v7x
topology: tpu7x:2x2x1
jax: 0.10.0
libtpu: 0.0.40
codegen_flags: <defaults>
</compile_context>

<pallas_src>
import jax
import jax.numpy as jnp
from jax.experimental import pallas as pl
from jax.experimental.pallas import tpu as pltpu


def _divisors(n):
    return [d for d in range(1, n + 1) if n % d == 0]


def _choose_tiles(l2, batch, row_bytes, budget_bytes=4 * 1024 * 1024):
    """Pick (l_tile, b_tile) so the lane-dense output block fits `budget_bytes`.

    Layout legality: the last two dims of the output block are (b_tile, HPE); HPE is
    always the full array extent, so only b_tile must be the full batch or a multiple
    of 8. l_tile (leading dim) is unconstrained, so we take the largest divisor of L2
    that still fits the budget.
    """
    if batch * row_bytes <= budget_bytes:
        b_tile = batch  # full-extent block: always satisfies the (8,128) tiling rule
    else:
        cands = [d for d in _divisors(batch) if d % 8 == 0 and d * row_bytes <= budget_bytes]
        # Fallback: full batch (always layout-legal); vmem_limit_bytes is raised below.
        b_tile = max(cands) if cands else batch

    cands = [d for d in _divisors(l2) if d * b_tile * row_bytes <= budget_bytes]
    l_tile = max(cands) if cands else 1
    return l_tile, b_tile


def flat_prefix_tuning_forward(
    control_trans,
    batch_size,
    *,
    prefix_length,
    n_layers,
    n_heads,
    input_size,
    dropout_p=0.0,
    seed=0,
):
    """Returns a tuple of n_layers arrays, each of shape (2, B, n_heads, P, E)."""
    assert input_size % n_heads == 0
    n_embd_per_head = input_size // n_heads
    P, H, E = prefix_length, n_heads, n_embd_per_head
    L2 = n_layers * 2
    B = batch_size
    HPE = H * P * E
    dtype = control_trans.dtype
    itemsize = jnp.dtype(dtype).itemsize

    # Pre-permute the (tiny, B-independent) parameter once outside the kernel:
    # flat == (P, L2, H, E) row-major  ->  (L2, H, P, E)  ->  lane-dense (L2, 1, H*P*E).
    param_t = (
        control_trans.reshape(P, L2, H, E).transpose(1, 2, 0, 3).reshape(L2, 1, HPE)
    )
    seed_arr = jnp.array([seed], dtype=jnp.int32)

    l_tile, b_tile = _choose_tiles(L2, B, HPE * itemsize)
    n_l = L2 // l_tile
    n_b = B // b_tile
    keep_scale = 1.0 / (1.0 - dropout_p) if dropout_p > 0.0 else 1.0

    # VMEM budget: double-buffered output + input blocks, plus headroom.
    out_block_bytes = l_tile * b_tile * HPE * itemsize
    in_block_bytes = l_tile * HPE * itemsize
    vmem_limit = min(max(2 * (out_block_bytes + in_block_bytes) + (1 << 20), 16 << 20), 64 << 20)

    def kernel(seed_ref, param_ref, out_ref):
        # param_ref: (l_tile, 1, HPE) per-layer-pair rows (bb-independent -> stays resident).
        # out_ref  : (l_tile, b_tile, HPE) lane-dense output block for (lb, bb).
        x = jnp.broadcast_to(param_ref[...], out_ref.shape)  # batch expand: sublane broadcast
        if dropout_p > 0.0:
            # PyTorch dropout is applied after the batch expand, so every batch element
            # needs an independent mask: draw bits for the whole block with a per-block seed.
            lb = pl.program_id(0)
            bb = pl.program_id(1)
            pltpu.prng_seed(seed_ref[0] + lb * pl.num_programs(1) + bb)
            bits = pltpu.bitcast(pltpu.prng_random_bits(out_ref.shape), jnp.uint32)
            thresh = jnp.uint32(min(int(dropout_p * (2**32)), 2**32 - 1))
            keep = bits >= thresh
            # Precomputed inverse-keep scale (multiply, no per-element divide).
            x = jnp.where(keep, x * keep_scale, jnp.zeros_like(x))
            # TODO(synk): mask is not bit-identical to torch's RNG stream (impossible to
            # match); keep-probability bias is < 2^-32.
        out_ref[...] = x

    out = pl.pallas_call(
        kernel,
        out_shape=jax.ShapeDtypeStruct((L2, B, HPE), dtype),
        grid_spec=pltpu.PrefetchScalarGridSpec(
            num_scalar_prefetch=1,
            grid=(n_l, n_b),  # batch innermost: param block index is bb-independent
            in_specs=[
                pl.BlockSpec(
                    (l_tile, 1, HPE),
                    lambda lb, bb, seed: (lb, 0, 0),
                )
            ],
            out_specs=pl.BlockSpec(
                (l_tile, b_tile, HPE),
                lambda lb, bb, seed: (lb, bb, 0),
            ),
        ),
        compiler_params=pltpu.CompilerParams(
            dimension_semantics=("parallel", "parallel"),
            vmem_limit_bytes=vmem_limit,
        ),
    )(seed_arr, param_t)

    # Free view back to (L2, B, H, P, E); torch .split(2) along dim 0.
    out = out.reshape(L2, B, H, P, E)
    return tuple(out[2 * i : 2 * i + 2] for i in range(n_layers))


def _reference(control_trans, batch_size, *, prefix_length, n_layers, n_heads, input_size):
    """Pure-JAX reference (dropout in eval mode = identity)."""
    E = input_size // n_heads
    P, H, L2, B = prefix_length, n_heads, n_layers * 2, batch_size
    kv = jnp.broadcast_to(control_trans[None, :], (B, control_trans.shape[0]))
    kv = kv.reshape(B, P, L2, H, E)
    kv = jnp.transpose(kv, (2, 0, 3, 1, 4))  # (L2, B, H, P, E)
    return tuple(kv[2 * i : 2 * i + 2] for i in range(n_layers))


if __name__ == "__main__":
    # Small, deterministic config consistent with the module's __init__.
    n_layers = 3
    n_heads = 4
    input_size = 32            # hidden size
    prefix_length = 8
    batch_size = 2
    dropout_p = 0.0            # eval-mode dropout (identity); set >0 to exercise PRNG path

    flat_len = prefix_length * n_layers * 2 * input_size
    key = jax.random.PRNGKey(0)
    # nn.Parameter(torch.randn(...)) -> standard normal init
    control_trans = jax.random.normal(key, (flat_len,), dtype=jnp.float32)

    out = flat_prefix_tuning_forward(
        control_trans,
        batch_size,
        prefix_length=prefix_length,
        n_layers=n_layers,
        n_heads=n_heads,
        input_size=input_size,
        dropout_p=dropout_p,
        seed=0,
    )
    out = jax.block_until_ready(out)

    ref = _reference(
        control_trans,
        batch_size,
        prefix_length=prefix_length,
        n_layers=n_layers,
        n_heads=n_heads,
        input_size=input_size,
    )

    assert len(out) == n_layers
    for o, r in zip(out, ref):
        assert o.shape == (2, batch_size, n_heads, prefix_length, input_size // n_heads), o.shape
        assert o.dtype == jnp.float32
        assert jnp.allclose(o, r), "mismatch vs pure-JAX reference"

    print("KERNEL_OK")
</pallas_src>

<mosaic_0001>
module attributes {stable_mosaic.version = 11 : i64} {
  func.func @kernel(%arg0: i32, %arg1: i32, %arg2: memref<1xi32, #tpu.memory_space<smem>>, %arg3: memref<6x1x256xf32, #tpu.memory_space<vmem>>, %arg4: memref<6x2x256xf32, #tpu.memory_space<vmem>>) attributes {dimension_semantics = [#tpu.dimension_semantics<parallel>, #tpu.dimension_semantics<parallel>], iteration_bounds = array<i64: 1, 1>, scalar_prefetch = 1 : i64, scratch_operands = 0 : i64, tpu.core_type = #tpu.core_type<tc>, window_params = [{transform_indices = @transform_0, window_bounds = array<i64: 6, 1, 256>}, {transform_indices = @transform_1, window_bounds = array<i64: 6, 2, 256>}]} {
    %c0 = arith.constant 0 : index
    %c0_0 = arith.constant 0 : index
    %c0_1 = arith.constant 0 : index
    %0 = vector.load %arg3[%c0, %c0_0, %c0_1] : memref<6x1x256xf32, #tpu.memory_space<vmem>>, vector<6x1x256xf32>
    %1 = vector.shape_cast %0 : vector<6x1x256xf32> to vector<6x1x256xf32>
    %2 = vector.broadcast %1 : vector<6x1x256xf32> to vector<6x2x256xf32>
    %c0_2 = arith.constant 0 : index
    %c0_3 = arith.constant 0 : index
    %c0_4 = arith.constant 0 : index
    %3 = vector.load %arg4[%c0_2, %c0_3, %c0_4] : memref<6x2x256xf32, #tpu.memory_space<vmem>>, vector<6x2x256xf32>
    tpu.vector_store %arg4[%c0_2, %c0_3, %c0_4], %2 {strides = array<i32>} : memref<6x2x256xf32, #tpu.memory_space<vmem>>, vector<6x2x256xf32>,
    return
  }
  func.func @transform_0(%arg0: i32, %arg1: i32, %arg2: memref<1xi32, #tpu.memory_space<smem>>) -> (i32, i32, i32) {
    %c0_i32 = arith.constant 0 : i32
    %c0_i32_0 = arith.constant 0 : i32
    %c0_i32_1 = arith.constant 0 : i32
    return %arg0, %c0_i32, %c0_i32_0 : i32, i32, i32
  }
  func.func @transform_1(%arg0: i32, %arg1: i32, %arg2: memref<1xi32, #tpu.memory_space<smem>>) -> (i32, i32, i32) {
    %c0_i32 = arith.constant 0 : i32
    %c0_i32_0 = arith.constant 0 : i32
    return %arg0, %arg1, %c0_i32 : i32, i32, i32
  }
}

</mosaic_0001>

<bundles_post_ra>
// kernel: tpu_custom_call.1
= control target key start
LH: loop header
LB: loop body
LE: loop exit
PB: predicated region body
PF: predicated region fallthrough
CT: control target
= control target key end

     0   :  { %8 = vsyncpa [#allocation5], 0  ;;  %s267_s0 = inlined_call_operand.<no memory space> [shape: s32[1], index: 0, kind: input, shape index: {}]   ;;  %s268_s1 = inlined_call_operand.hbm [shape: f32[6,1,256], index: 1, kind: input, shape index: {}]   ;;  %s269_s2 = inlined_call_operand.hbm [shape: f32[6,2,256], index: 2, kind: output, shape index: {}]  }
   0x1   :  { %9 = vsyncpa [#allocation6], 0  ;;  %s222_s9 = smov [#allocation4]   ;;  %s174_s13 = scalar_lea.hbm %s268_s1, 192 }
   0x2   :  { %s15_s10 = sshll.u32 %s222_s9, 4  ;;  %p175_p0 = scmp.ne.s32.totalorder %s268_s1, %s174_s13  ;;  %s16_s10 = int_to_ptr.vmem [resolvable:$true] %s15_s10 }
   0x3   :  { %p178_p1 = scmp.lt.u32.totalorder %s174_s13, %s268_s1 }
   0x5   :  { %p180_p2 = pnand %p178_p1, %p175_p0 }
   0x7   :  { %183 = shalt.err (!%p180_p2)
}
   0x8   :  { %s184_s17 = scalar_lea.vmem %s16_s10, 192  ;;  %p189_p4 = scmp.lt.s32.totalorder %s16_s10, %s16_s10 }
   0x9   :  { %p185_p3 = scmp.ne.s32.totalorder %s16_s10, %s184_s17  ;;  %p190_p5 = scmp.lt.s32.totalorder %s184_s17, %s184_s17 }
   0xb   :  { %p191_p6 = por %p190_p5, %p189_p4 }
   0xd   :  { %p192_p7 = pnand %p191_p6, %p185_p3 }
   0xf   :  { %195 = shalt.err (!%p192_p7)
}
  0x10   :  { %s223_s18 = smov 32   ;;  %s224_s19 = smov 2  }
  0x11   :  { %21 = dma.hbm_to_vmem [thread:$0]  %s268_s1, 192, %s16_s10, [#allocation5], %s223_s18, %s223_s18, %s224_s19  }
  0x12   :  { %218 = dma.done.wait [#allocation5], 192  }
  0x13   :  { %219 = vsyncadd [#allocation5], 4294967104  ;;  %v37_v0 = vlaneseq  ;;  %v25_v4 = vld [vmem:[#allocation4] sm:$0x3]  ;;  %v26_v5 = vld [vmem:[#allocation4 + $0x2] sm:$0x3] }
  0x14   :  { %v27_v6 = vld [vmem:[#allocation4 + $0x4] sm:$0x3]  ;;  %v28_v11 = vld [vmem:[#allocation4 + $0x6] sm:$0x3]  ;;  %v29_v12 = vld [vmem:[#allocation4 + $0x8] sm:$0x3] }
  0x15   :  { %v38_v1 = vshrl.u32 %v37_v0, 7  ;;  %v30_v13 = vld [vmem:[#allocation4 + $0xa] sm:$0x3]  ;;  %s225_s1 = smov [#allocation7]  }
  0x16   :  { %s150_s22 = sshll.u32 %s225_s1, 4  ;;  %s151_s22 = int_to_ptr.vmem [resolvable:$true] %s150_s22 }
  0x17   :  { %v39_v2 = vsub.s32 0, %v38_v1  ;;  %v43_v3 = vsub.s32 1, %v38_v1  ;;  %s196_s23 = scalar_lea.vmem %s151_s22, 384  ;;  %p201_p9 = scmp.lt.s32.totalorder %s151_s22, %s151_s22 }
  0x18   :  { %p197_p8 = scmp.ne.s32.totalorder %s151_s22, %s196_s23  ;;  %p202_p10 = scmp.lt.s32.totalorder %s196_s23, %s196_s23 }
  0x19   :  { %v40_v7 = vrot.slane %v25_v4, %v39_v2  ;;  %v44_v8 = vrot.slane %v25_v4, %v43_v3  ;;  %v48_v9 = vrot.slane %v26_v5, %v39_v2  ;;  %v52_v10 = vrot.slane %v26_v5, %v43_v3 }
  0x1a   :  { %v56_v14 = vrot.slane %v27_v6, %v39_v2  ;;  %v60_v15 = vrot.slane %v27_v6, %v43_v3  ;;  %v64_v16 = vrot.slane %v28_v11, %v39_v2  ;;  %v68_v17 = vrot.slane %v28_v11, %v43_v3  ;;  %p203_p11 = por %p202_p10, %p201_p9 }
  0x1b   :  { %v85_v18 = vcombine.low %v40_v7, %v44_v8  ;;  %v93_v19 = vcombine.low %v48_v9, %v52_v10  ;;  %v72_v20 = vrot.slane %v29_v12, %v39_v2  ;;  %v76_v21 = vrot.slane %v29_v12, %v43_v3 }
  0x1c   :  { %v101_v22 = vcombine.low %v56_v14, %v60_v15  ;;  %v109_v23 = vcombine.low %v64_v16, %v68_v17  ;;  %v80_v24 = vrot.slane %v30_v13, %v39_v2  ;;  %v84_v25 = vrot.slane %v30_v13, %v43_v3  ;;  %p204_p12 = pnand %p203_p11, %p197_p8 }
  0x1d   :  { %162 = vst.sshfl [vmem:[#allocation7] sm:$0x33 pattern:$0x76325410] %v85_v18  ;;  %v117_v26 = vcombine.low %v72_v20, %v76_v21 }
  0x1e   :  { %163 = vst.sshfl [vmem:[#allocation7 + $0x4] sm:$0x33 pattern:$0x76325410] %v93_v19  ;;  %v125_v27 = vcombine.low %v80_v24, %v84_v25 }
  0x1f   :  { %164 = vst.sshfl [vmem:[#allocation7 + $0x8] sm:$0x33 pattern:$0x76325410] %v101_v22 }
  0x20   :  { %165 = vst.sshfl [vmem:[#allocation7 + $0xc] sm:$0x33 pattern:$0x76325410] %v109_v23 }
  0x21   :  { %166 = vst.sshfl [vmem:[#allocation7 + $0x10] sm:$0x33 pattern:$0x76325410] %v117_v26 }
  0x22   :  { %167 = vst.sshfl [vmem:[#allocation7 + $0x14] sm:$0x33 pattern:$0x76325410] %v125_v27 }
  0x23   :  { %207 = shalt.err (!%p204_p12)
}
  0x24   :  { %s208_s26 = scalar_lea.hbm %s269_s2, 384 }
  0x25   :  { %p209_p13 = scmp.ne.s32.totalorder %s269_s2, %s208_s26  ;;  %p212_p0 = scmp.lt.u32.totalorder %s208_s26, %s269_s2 }
  0x27   :  { %p214_p1 = pnand %p212_p0, %p209_p13 }
  0x29   :  { %217 = shalt.err (!%p214_p1)
}
  0x2a   :  { %s226_s3 = smov 64   ;;  %s227_s4 = smov 4  }
  0x2b   :  { %156 = dma.vmem_to_hbm [thread:$0]  %s151_s22, 384, %s269_s2, [#allocation6], %s226_s3, %s226_s3, %s227_s4  }
  0x2c   :  { %220 = dma.done.wait [#allocation6], 384  }
  0x2d   :  { %221 = vsyncadd [#allocation6], 4294966912 }
  0x2e   :  { %160 = vsyncpa [#allocation5], 1 }
  0x2f   :  { %161 = vsyncpa [#allocation6], 1 }

</bundles_post_ra>
